<compile_context>
chip_gen: v6e
topology: v6e:2x2x1
jax: 0.10.0
libtpu: 0.0.40
codegen_flags: <defaults>
</compile_context>

<pallas_src>
import functools

import numpy as np
import jax
import jax.numpy as jnp
from jax import lax
from jax.experimental import pallas as pl
from jax.experimental.pallas import tpu as pltpu

MAX_ITER = 10
EPSILON = 1e-4


def _sinkhorn_kernel(nrows_ref, ncols_ref, s_ref, o_ref, *, n1, n2,
                     max_iter, epsilon):
    # Block is (Bt, M, N): Bt batch elements per grid step, full rows/cols.
    Bt, M, N = s_ref.shape

    s = s_ref[...]                                  # (Bt, M, N) float32

    ri = lax.broadcasted_iota(jnp.int32, (Bt, M, N), 1)   # row index
    ci = lax.broadcasted_iota(jnp.int32, (Bt, M, N), 2)   # col index

    r_b = nrows_ref[...]                            # (Bt, 1, 1) int32
    c_b = ncols_ref[...]                            # (Bt, 1, 1) int32

    # Masks hoisted out of the iteration loop (computed once).
    row_mask = ri < r_b                             # rows 0..r-1
    col_mask = ci < c_b                             # cols 0..c-1
    rc_mask = row_mask & col_mask                   # [0:r, 0:c] block

    # s += epsilon ; s[:, :n1, n2:] = 0 ; s[:, n1:, :n2] = 0
    zero_block = ((ri < n1) & (ci >= n2)) | ((ri >= n1) & (ci < n2))
    s = jnp.where(zero_block, 0.0, s + epsilon)

    if max_iter > 0:
        # Pre-zero s outside the [0:r, 0:c] block.  Identical to torch for
        # max_iter >= 1 (tmp is zero there every iteration), and makes every
        # later reduction implicitly masked (no per-iteration mask multiply).
        s = jnp.where(rc_mask, s, 0.0)

    def recip(d):
        # EUP approx reciprocal + 2 Newton steps (~f32-exact), on the reduced
        # (Bt,1,N)/(Bt,M,1) array only — keeps a long f32 divide off the VALU.
        x = pl.reciprocal(d, approx=True)
        x = x * (2.0 - d * x)
        x = x * (2.0 - d * x)
        return x

    def half_step(s, axis):
        # torch: masked sum over the reduction axis (ones-block matmul), then
        # 1/sum inside the [0:r, 0:c] block (0 outside), then multiply.
        # s is already zero outside [0:r, 0:c], so a plain sum suffices.
        denom = jnp.sum(s, axis=axis, keepdims=True)
        return s * jnp.where(rc_mask, recip(denom), 0.0)

    def pair(_, s):
        s = half_step(s, 1)      # even iter: row_norm_ones @ s  (column sums)
        s = half_step(s, 2)      # odd iter:  s @ col_norm_ones  (row sums)
        return s

    s = lax.fori_loop(0, max_iter // 2, pair, s, unroll=True)
    if max_iter % 2 == 1:
        s = half_step(s, 1)

    o_ref[...] = s.astype(o_ref.dtype)


def _pick_block_b(B, M, N, tile_budget_bytes=8 << 20):
    """Batches per grid step: largest divisor of B that (a) keeps >= 2 grid
    steps when B >= 2 (both v7x TensorCores busy) and (b) keeps the
    double-buffered in+out f32 tiles within a modest VMEM budget."""
    per_batch_bytes = M * N * 4
    cap = max(1, tile_budget_bytes // (4 * per_batch_bytes))  # 2 bufs x (in+out)
    max_bb = min(cap, B if B < 2 else max(1, B // 2))
    bb = 1
    for d in range(1, B + 1):
        if B % d == 0 and d <= max_bb:
            bb = d
    return bb


def sinkhorn_pallas(s, n1, n2, nrows=None, ncols=None,
                    max_iter=MAX_ITER, epsilon=EPSILON, block_b=None):
    """Pallas equivalent of Sinkhorn.forward for 3-D s = (B, M, N)."""
    s = jnp.asarray(s, jnp.float32)
    B, M, N = s.shape

    # torch defaults (quirk preserved): row_slice -> s.shape[2], col_slice -> s.shape[1]
    nrows_arr = (jnp.full((B,), N, jnp.int32) if nrows is None
                 else jnp.asarray(nrows, jnp.int32)).reshape(B, 1, 1)
    ncols_arr = (jnp.full((B,), M, jnp.int32) if ncols is None
                 else jnp.asarray(ncols, jnp.int32)).reshape(B, 1, 1)

    if block_b is None:
        block_b = _pick_block_b(B, M, N)
    assert B % block_b == 0, (B, block_b)
    grid = (B // block_b,)

    kernel = functools.partial(
        _sinkhorn_kernel, n1=int(n1), n2=int(n2),
        max_iter=int(max_iter), epsilon=float(epsilon))

    return pl.pallas_call(
        kernel,
        out_shape=jax.ShapeDtypeStruct((B, M, N), jnp.float32),
        grid_spec=pl.GridSpec(
            grid=grid,
            in_specs=[
                pl.BlockSpec((block_b, 1, 1), lambda b: (b, 0, 0)),   # nrows
                pl.BlockSpec((block_b, 1, 1), lambda b: (b, 0, 0)),   # ncols
                pl.BlockSpec((block_b, M, N), lambda b: (b, 0, 0)),   # s
            ],
            out_specs=pl.BlockSpec((block_b, M, N), lambda b: (b, 0, 0)),
        ),
        compiler_params=pltpu.CompilerParams(
            dimension_semantics=("parallel",)),
    )(nrows_arr, ncols_arr, s)


# ---------------- pure-numpy reference (mirrors the torch code) ----------------
def sinkhorn_ref(s, n1, n2, nrows=None, ncols=None,
                 max_iter=MAX_ITER, epsilon=EPSILON):
    s = np.array(s, np.float32).copy()
    B, M, N = s.shape
    row_ones = np.zeros((B, M, M), np.float32)
    col_ones = np.zeros((B, N, N), np.float32)
    for b in range(B):
        r = int(nrows[b]) if nrows is not None else N
        c = int(ncols[b]) if ncols is not None else M
        row_ones[b, :r, :r] = 1
        col_ones[b, :c, :c] = 1
    s += epsilon
    s[:, :n1, n2:] = 0
    s[:, n1:, :n2] = 0
    for i in range(max_iter):
        if i % 2 == 1:
            sm = np.einsum('bij,bjk->bik', s, col_ones)
        else:
            sm = np.einsum('bij,bjk->bik', row_ones, s)
        tmp = np.zeros_like(s)
        for b in range(B):
            r = int(nrows[b]) if nrows is not None else N
            c = int(ncols[b]) if ncols is not None else M
            tmp[b, :r, :c] = 1.0 / sm[b, :r, :c]
        s = s * tmp
    return s


# TODO(synk): the 4-D (B, M, N, K) branch of the torch module is not implemented;
# only the 3-D similarity-matrix path is covered.

if __name__ == "__main__":
    key = jax.random.PRNGKey(0)

    # Small case with explicit nrows / ncols.
    B, M, N = 2, 8, 8
    s = jax.random.uniform(key, (B, M, N), jnp.float32, minval=0.1, maxval=1.1)
    n1, n2 = 5, 5
    nrows = np.array([6, 8], np.int32)
    ncols = np.array([7, 8], np.int32)

    out = jax.block_until_ready(sinkhorn_pallas(s, n1, n2, nrows, ncols))
    ref = sinkhorn_ref(np.asarray(s), n1, n2, nrows, ncols)
    np.testing.assert_allclose(np.asarray(out), ref, rtol=1e-5, atol=1e-5)

    # Default-nrows/ncols (torch quirk) path.
    out2 = jax.block_until_ready(sinkhorn_pallas(s, n1, n2))
    ref2 = sinkhorn_ref(np.asarray(s), n1, n2)
    np.testing.assert_allclose(np.asarray(out2), ref2, rtol=1e-5, atol=1e-5)

    # A lane-dense case exercising block_b > 1.
    key2 = jax.random.PRNGKey(1)
    B3, M3, N3 = 4, 16, 128
    s3 = jax.random.uniform(key2, (B3, M3, N3), jnp.float32, minval=0.1, maxval=1.1)
    nrows3 = np.array([10, 16, 12, 16], np.int32)
    ncols3 = np.array([100, 128, 64, 128], np.int32)
    out3 = jax.block_until_ready(sinkhorn_pallas(s3, 12, 96, nrows3, ncols3))
    ref3 = sinkhorn_ref(np.asarray(s3), 12, 96, nrows3, ncols3)
    np.testing.assert_allclose(np.asarray(out3), ref3, rtol=1e-5, atol=1e-5)

    print("KERNEL_OK")
</pallas_src>

<mosaic_0001>
module attributes {stable_mosaic.version = 11 : i64} {
  func.func @_sinkhorn_kernel(%arg0: i32, %arg1: memref<1x1x1xi32, #tpu.memory_space<vmem>>, %arg2: memref<1x1x1xi32, #tpu.memory_space<vmem>>, %arg3: memref<1x8x8xf32, #tpu.memory_space<vmem>>, %arg4: memref<1x8x8xf32, #tpu.memory_space<vmem>>) attributes {dimension_semantics = [#tpu.dimension_semantics<parallel>], iteration_bounds = array<i64: 2>, scalar_prefetch = 0 : i64, scratch_operands = 0 : i64, tpu.core_type = #tpu.core_type<tc>, window_params = [{transform_indices = @transform_0, window_bounds = array<i64: 1, 1, 1>}, {transform_indices = @transform_1, window_bounds = array<i64: 1, 1, 1>}, {transform_indices = @transform_2, window_bounds = array<i64: 1, 8, 8>}, {transform_indices = @transform_3, window_bounds = array<i64: 1, 8, 8>}]} {
    %c0 = arith.constant 0 : index
    %c0_0 = arith.constant 0 : index
    %c0_1 = arith.constant 0 : index
    %0 = vector.load %arg3[%c0, %c0_0, %c0_1] : memref<1x8x8xf32, #tpu.memory_space<vmem>>, vector<1x8x8xf32>
    %1 = tpu.iota {dimensions = array<i32: 1>} : vector<1x8x8xi32>
    %2 = tpu.iota {dimensions = array<i32: 2>} : vector<1x8x8xi32>
    %c0_2 = arith.constant 0 : index
    %c0_3 = arith.constant 0 : index
    %c0_4 = arith.constant 0 : index
    %3 = vector.load %arg1[%c0_2, %c0_3, %c0_4] : memref<1x1x1xi32, #tpu.memory_space<vmem>>, vector<1x1x1xi32>
    %c0_5 = arith.constant 0 : index
    %c0_6 = arith.constant 0 : index
    %c0_7 = arith.constant 0 : index
    %4 = vector.load %arg2[%c0_5, %c0_6, %c0_7] : memref<1x1x1xi32, #tpu.memory_space<vmem>>, vector<1x1x1xi32>
    %5 = vector.broadcast %3 : vector<1x1x1xi32> to vector<1x8x8xi32>
    %6 = arith.cmpi slt, %1, %5 : vector<1x8x8xi32>
    %7 = vector.broadcast %4 : vector<1x1x1xi32> to vector<1x8x8xi32>
    %8 = arith.cmpi slt, %2, %7 : vector<1x8x8xi32>
    %9 = arith.andi %6, %8 : vector<1x8x8xi1>
    %c5_i32 = arith.constant 5 : i32
    %10 = vector.broadcast %c5_i32 : i32 to vector<1x8x8xi32>
    %11 = arith.cmpi slt, %1, %10 : vector<1x8x8xi32>
    %c5_i32_8 = arith.constant 5 : i32
    %12 = vector.broadcast %c5_i32_8 : i32 to vector<1x8x8xi32>
    %13 = arith.cmpi sge, %2, %12 : vector<1x8x8xi32>
    %14 = arith.andi %11, %13 : vector<1x8x8xi1>
    %c5_i32_9 = arith.constant 5 : i32
    %15 = vector.broadcast %c5_i32_9 : i32 to vector<1x8x8xi32>
    %16 = arith.cmpi sge, %1, %15 : vector<1x8x8xi32>
    %c5_i32_10 = arith.constant 5 : i32
    %17 = vector.broadcast %c5_i32_10 : i32 to vector<1x8x8xi32>
    %18 = arith.cmpi slt, %2, %17 : vector<1x8x8xi32>
    %19 = arith.andi %16, %18 : vector<1x8x8xi1>
    %20 = arith.ori %14, %19 : vector<1x8x8xi1>
    %cst = arith.constant 9.99999974E-5 : f32
    %21 = vector.broadcast %cst : f32 to vector<1x8x8xf32>
    %22 = arith.addf %0, %21 : vector<1x8x8xf32>
    %cst_11 = arith.constant 0.000000e+00 : f32
    %23 = vector.broadcast %cst_11 : f32 to vector<1x8x8xf32>
    %24 = arith.select %20, %23, %22 : vector<1x8x8xi1>, vector<1x8x8xf32>
    %cst_12 = arith.constant 0.000000e+00 : f32
    %25 = vector.broadcast %cst_12 : f32 to vector<1x8x8xf32>
    %26 = arith.select %9, %24, %25 : vector<1x8x8xi1>, vector<1x8x8xf32>
    %c0_i32 = arith.constant 0 : i32
    %cst_13 = arith.constant dense<0.000000e+00> : vector<1x8xf32>
    %27 = vector.multi_reduction <add>, %26, %cst_13 [1] : vector<1x8x8xf32> to vector<1x8xf32>
    %28 = vector.shape_cast %27 : vector<1x8xf32> to vector<1x1x8xf32>
    %29 = tpu.reciprocal %28 {approx = true} : vector<1x1x8xf32> -> vector<1x1x8xf32>
    %30 = arith.mulf %28, %29 : vector<1x1x8xf32>
    %cst_14 = arith.constant 2.000000e+00 : f32
    %31 = vector.broadcast %cst_14 : f32 to vector<1x1x8xf32>
    %32 = arith.subf %31, %30 : vector<1x1x8xf32>
    %33 = arith.mulf %29, %32 : vector<1x1x8xf32>
    %34 = arith.mulf %28, %33 : vector<1x1x8xf32>
    %cst_15 = arith.constant 2.000000e+00 : f32
    %35 = vector.broadcast %cst_15 : f32 to vector<1x1x8xf32>
    %36 = arith.subf %35, %34 : vector<1x1x8xf32>
    %37 = arith.mulf %33, %36 : vector<1x1x8xf32>
    %cst_16 = arith.constant 0.000000e+00 : f32
    %38 = vector.shape_cast %37 : vector<1x1x8xf32> to vector<1x1x8xf32>
    %39 = vector.broadcast %38 : vector<1x1x8xf32> to vector<1x8x8xf32>
    %40 = vector.broadcast %cst_16 : f32 to vector<1x8x8xf32>
    %41 = arith.select %9, %39, %40 : vector<1x8x8xi1>, vector<1x8x8xf32>
    %42 = arith.mulf %26, %41 : vector<1x8x8xf32>
    %cst_17 = arith.constant dense<0.000000e+00> : vector<1x8xf32>
    %43 = vector.multi_reduction <add>, %42, %cst_17 [2] : vector<1x8x8xf32> to vector<1x8xf32>
    %44 = vector.shape_cast %43 : vector<1x8xf32> to vector<1x8x1xf32>
    %45 = tpu.reciprocal %44 {approx = true} : vector<1x8x1xf32> -> vector<1x8x1xf32>
    %46 = arith.mulf %44, %45 : vector<1x8x1xf32>
    %cst_18 = arith.constant 2.000000e+00 : f32
    %47 = vector.broadcast %cst_18 : f32 to vector<1x8x1xf32>
    %48 = arith.subf %47, %46 : vector<1x8x1xf32>
    %49 = arith.mulf %45, %48 : vector<1x8x1xf32>
    %50 = arith.mulf %44, %49 : vector<1x8x1xf32>
    %cst_19 = arith.constant 2.000000e+00 : f32
    %51 = vector.broadcast %cst_19 : f32 to vector<1x8x1xf32>
    %52 = arith.subf %51, %50 : vector<1x8x1xf32>
    %53 = arith.mulf %49, %52 : vector<1x8x1xf32>
    %cst_20 = arith.constant 0.000000e+00 : f32
    %54 = vector.shape_cast %53 : vector<1x8x1xf32> to vector<1x8x1xf32>
    %55 = vector.broadcast %54 : vector<1x8x1xf32> to vector<1x8x8xf32>
    %56 = vector.broadcast %cst_20 : f32 to vector<1x8x8xf32>
    %57 = arith.select %9, %55, %56 : vector<1x8x8xi1>, vector<1x8x8xf32>
    %58 = arith.mulf %42, %57 : vector<1x8x8xf32>
    %c1_i32 = arith.constant 1 : i32
    %cst_21 = arith.constant dense<0.000000e+00> : vector<1x8xf32>
    %59 = vector.multi_reduction <add>, %58, %cst_21 [1] : vector<1x8x8xf32> to vector<1x8xf32>
    %60 = vector.shape_cast %59 : vector<1x8xf32> to vector<1x1x8xf32>
    %61 = tpu.reciprocal %60 {approx = true} : vector<1x1x8xf32> -> vector<1x1x8xf32>
    %62 = arith.mulf %60, %61 : vector<1x1x8xf32>
    %cst_22 = arith.constant 2.000000e+00 : f32
    %63 = vector.broadcast %cst_22 : f32 to vector<1x1x8xf32>
    %64 = arith.subf %63, %62 : vector<1x1x8xf32>
    %65 = arith.mulf %61, %64 : vector<1x1x8xf32>
    %66 = arith.mulf %60, %65 : vector<1x1x8xf32>
    %cst_23 = arith.constant 2.000000e+00 : f32
    %67 = vector.broadcast %cst_23 : f32 to vector<1x1x8xf32>
    %68 = arith.subf %67, %66 : vector<1x1x8xf32>
    %69 = arith.mulf %65, %68 : vector<1x1x8xf32>
    %cst_24 = arith.constant 0.000000e+00 : f32
    %70 = vector.shape_cast %69 : vector<1x1x8xf32> to vector<1x1x8xf32>
    %71 = vector.broadcast %70 : vector<1x1x8xf32> to vector<1x8x8xf32>
    %72 = vector.broadcast %cst_24 : f32 to vector<1x8x8xf32>
    %73 = arith.select %9, %71, %72 : vector<1x8x8xi1>, vector<1x8x8xf32>
    %74 = arith.mulf %58, %73 : vector<1x8x8xf32>
    %cst_25 = arith.constant dense<0.000000e+00> : vector<1x8xf32>
    %75 = vector.multi_reduction <add>, %74, %cst_25 [2] : vector<1x8x8xf32> to vector<1x8xf32>
    %76 = vector.shape_cast %75 : vector<1x8xf32> to vector<1x8x1xf32>
    %77 = tpu.reciprocal %76 {approx = true} : vector<1x8x1xf32> -> vector<1x8x1xf32>
    %78 = arith.mulf %76, %77 : vector<1x8x1xf32>
    %cst_26 = arith.constant 2.000000e+00 : f32
    %79 = vector.broadcast %cst_26 : f32 to vector<1x8x1xf32>
    %80 = arith.subf %79, %78 : vector<1x8x1xf32>
    %81 = arith.mulf %77, %80 : vector<1x8x1xf32>
    %82 = arith.mulf %76, %81 : vector<1x8x1xf32>
    %cst_27 = arith.constant 2.000000e+00 : f32
    %83 = vector.broadcast %cst_27 : f32 to vector<1x8x1xf32>
    %84 = arith.subf %83, %82 : vector<1x8x1xf32>
    %85 = arith.mulf %81, %84 : vector<1x8x1xf32>
    %cst_28 = arith.constant 0.000000e+00 : f32
    %86 = vector.shape_cast %85 : vector<1x8x1xf32> to vector<1x8x1xf32>
    %87 = vector.broadcast %86 : vector<1x8x1xf32> to vector<1x8x8xf32>
    %88 = vector.broadcast %cst_28 : f32 to vector<1x8x8xf32>
    %89 = arith.select %9, %87, %88 : vector<1x8x8xi1>, vector<1x8x8xf32>
    %90 = arith.mulf %74, %89 : vector<1x8x8xf32>
    %c2_i32 = arith.constant 2 : i32
    %cst_29 = arith.constant dense<0.000000e+00> : vector<1x8xf32>
    %91 = vector.multi_reduction <add>, %90, %cst_29 [1] : vector<1x8x8xf32> to vector<1x8xf32>
    %92 = vector.shape_cast %91 : vector<1x8xf32> to vector<1x1x8xf32>
    %93 = tpu.reciprocal %92 {approx = true} : vector<1x1x8xf32> -> vector<1x1x8xf32>
    %94 = arith.mulf %92, %93 : vector<1x1x8xf32>
    %cst_30 = arith.constant 2.000000e+00 : f32
    %95 = vector.broadcast %cst_30 : f32 to vector<1x1x8xf32>
    %96 = arith.subf %95, %94 : vector<1x1x8xf32>
    %97 = arith.mulf %93, %96 : vector<1x1x8xf32>
    %98 = arith.mulf %92, %97 : vector<1x1x8xf32>
    %cst_31 = arith.constant 2.000000e+00 : f32
    %99 = vector.broadcast %cst_31 : f32 to vector<1x1x8xf32>
    %100 = arith.subf %99, %98 : vector<1x1x8xf32>
    %101 = arith.mulf %97, %100 : vector<1x1x8xf32>
    %cst_32 = arith.constant 0.000000e+00 : f32
    %102 = vector.shape_cast %101 : vector<1x1x8xf32> to vector<1x1x8xf32>
    %103 = vector.broadcast %102 : vector<1x1x8xf32> to vector<1x8x8xf32>
    %104 = vector.broadcast %cst_32 : f32 to vector<1x8x8xf32>
    %105 = arith.select %9, %103, %104 : vector<1x8x8xi1>, vector<1x8x8xf32>
    %106 = arith.mulf %90, %105 : vector<1x8x8xf32>
    %cst_33 = arith.constant dense<0.000000e+00> : vector<1x8xf32>
    %107 = vector.multi_reduction <add>, %106, %cst_33 [2] : vector<1x8x8xf32> to vector<1x8xf32>
    %108 = vector.shape_cast %107 : vector<1x8xf32> to vector<1x8x1xf32>
    %109 = tpu.reciprocal %108 {approx = true} : vector<1x8x1xf32> -> vector<1x8x1xf32>
    %110 = arith.mulf %108, %109 : vector<1x8x1xf32>
    %cst_34 = arith.constant 2.000000e+00 : f32
    %111 = vector.broadcast %cst_34 : f32 to vector<1x8x1xf32>
    %112 = arith.subf %111, %110 : vector<1x8x1xf32>
    %113 = arith.mulf %109, %112 : vector<1x8x1xf32>
    %114 = arith.mulf %108, %113 : vector<1x8x1xf32>
    %cst_35 = arith.constant 2.000000e+00 : f32
    %115 = vector.broadcast %cst_35 : f32 to vector<1x8x1xf32>
    %116 = arith.subf %115, %114 : vector<1x8x1xf32>
    %117 = arith.mulf %113, %116 : vector<1x8x1xf32>
    %cst_36 = arith.constant 0.000000e+00 : f32
    %118 = vector.shape_cast %117 : vector<1x8x1xf32> to vector<1x8x1xf32>
    %119 = vector.broadcast %118 : vector<1x8x1xf32> to vector<1x8x8xf32>
    %120 = vector.broadcast %cst_36 : f32 to vector<1x8x8xf32>
    %121 = arith.select %9, %119, %120 : vector<1x8x8xi1>, vector<1x8x8xf32>
    %122 = arith.mulf %106, %121 : vector<1x8x8xf32>
    %c3_i32 = arith.constant 3 : i32
    %cst_37 = arith.constant dense<0.000000e+00> : vector<1x8xf32>
    %123 = vector.multi_reduction <add>, %122, %cst_37 [1] : vector<1x8x8xf32> to vector<1x8xf32>
    %124 = vector.shape_cast %123 : vector<1x8xf32> to vector<1x1x8xf32>
    %125 = tpu.reciprocal %124 {approx = true} : vector<1x1x8xf32> -> vector<1x1x8xf32>
    %126 = arith.mulf %124, %125 : vector<1x1x8xf32>
    %cst_38 = arith.constant 2.000000e+00 : f32
    %127 = vector.broadcast %cst_38 : f32 to vector<1x1x8xf32>
    %128 = arith.subf %127, %126 : vector<1x1x8xf32>
    %129 = arith.mulf %125, %128 : vector<1x1x8xf32>
    %130 = arith.mulf %124, %129 : vector<1x1x8xf32>
    %cst_39 = arith.constant 2.000000e+00 : f32
    %131 = vector.broadcast %cst_39 : f32 to vector<1x1x8xf32>
    %132 = arith.subf %131, %130 : vector<1x1x8xf32>
    %133 = arith.mulf %129, %132 : vector<1x1x8xf32>
    %cst_40 = arith.constant 0.000000e+00 : f32
    %134 = vector.shape_cast %133 : vector<1x1x8xf32> to vector<1x1x8xf32>
    %135 = vector.broadcast %134 : vector<1x1x8xf32> to vector<1x8x8xf32>
    %136 = vector.broadcast %cst_40 : f32 to vector<1x8x8xf32>
    %137 = arith.select %9, %135, %136 : vector<1x8x8xi1>, vector<1x8x8xf32>
    %138 = arith.mulf %122, %137 : vector<1x8x8xf32>
    %cst_41 = arith.constant dense<0.000000e+00> : vector<1x8xf32>
    %139 = vector.multi_reduction <add>, %138, %cst_41 [2] : vector<1x8x8xf32> to vector<1x8xf32>
    %140 = vector.shape_cast %139 : vector<1x8xf32> to vector<1x8x1xf32>
    %141 = tpu.reciprocal %140 {approx = true} : vector<1x8x1xf32> -> vector<1x8x1xf32>
    %142 = arith.mulf %140, %141 : vector<1x8x1xf32>
    %cst_42 = arith.constant 2.000000e+00 : f32
    %143 = vector.broadcast %cst_42 : f32 to vector<1x8x1xf32>
    %144 = arith.subf %143, %142 : vector<1x8x1xf32>
    %145 = arith.mulf %141, %144 : vector<1x8x1xf32>
    %146 = arith.mulf %140, %145 : vector<1x8x1xf32>
    %cst_43 = arith.constant 2.000000e+00 : f32
    %147 = vector.broadcast %cst_43 : f32 to vector<1x8x1xf32>
    %148 = arith.subf %147, %146 : vector<1x8x1xf32>
    %149 = arith.mulf %145, %148 : vector<1x8x1xf32>
    %cst_44 = arith.constant 0.000000e+00 : f32
    %150 = vector.shape_cast %149 : vector<1x8x1xf32> to vector<1x8x1xf32>
    %151 = vector.broadcast %150 : vector<1x8x1xf32> to vector<1x8x8xf32>
    %152 = vector.broadcast %cst_44 : f32 to vector<1x8x8xf32>
    %153 = arith.select %9, %151, %152 : vector<1x8x8xi1>, vector<1x8x8xf32>
    %154 = arith.mulf %138, %153 : vector<1x8x8xf32>
    %c4_i32 = arith.constant 4 : i32
    %cst_45 = arith.constant dense<0.000000e+00> : vector<1x8xf32>
    %155 = vector.multi_reduction <add>, %154, %cst_45 [1] : vector<1x8x8xf32> to vector<1x8xf32>
    %156 = vector.shape_cast %155 : vector<1x8xf32> to vector<1x1x8xf32>
    %157 = tpu.reciprocal %156 {approx = true} : vector<1x1x8xf32> -> vector<1x1x8xf32>
    %158 = arith.mulf %156, %157 : vector<1x1x8xf32>
    %cst_46 = arith.constant 2.000000e+00 : f32
    %159 = vector.broadcast %cst_46 : f32 to vector<1x1x8xf32>
    %160 = arith.subf %159, %158 : vector<1x1x8xf32>
    %161 = arith.mulf %157, %160 : vector<1x1x8xf32>
    %162 = arith.mulf %156, %161 : vector<1x1x8xf32>
    %cst_47 = arith.constant 2.000000e+00 : f32
    %163 = vector.broadcast %cst_47 : f32 to vector<1x1x8xf32>
    %164 = arith.subf %163, %162 : vector<1x1x8xf32>
    %165 = arith.mulf %161, %164 : vector<1x1x8xf32>
    %cst_48 = arith.constant 0.000000e+00 : f32
    %166 = vector.shape_cast %165 : vector<1x1x8xf32> to vector<1x1x8xf32>
    %167 = vector.broadcast %166 : vector<1x1x8xf32> to vector<1x8x8xf32>
    %168 = vector.broadcast %cst_48 : f32 to vector<1x8x8xf32>
    %169 = arith.select %9, %167, %168 : vector<1x8x8xi1>, vector<1x8x8xf32>
    %170 = arith.mulf %154, %169 : vector<1x8x8xf32>
    %cst_49 = arith.constant dense<0.000000e+00> : vector<1x8xf32>
    %171 = vector.multi_reduction <add>, %170, %cst_49 [2] : vector<1x8x8xf32> to vector<1x8xf32>
    %172 = vector.shape_cast %171 : vector<1x8xf32> to vector<1x8x1xf32>
    %173 = tpu.reciprocal %172 {approx = true} : vector<1x8x1xf32> -> vector<1x8x1xf32>
    %174 = arith.mulf %172, %173 : vector<1x8x1xf32>
    %cst_50 = arith.constant 2.000000e+00 : f32
    %175 = vector.broadcast %cst_50 : f32 to vector<1x8x1xf32>
    %176 = arith.subf %175, %174 : vector<1x8x1xf32>
    %177 = arith.mulf %173, %176 : vector<1x8x1xf32>
    %178 = arith.mulf %172, %177 : vector<1x8x1xf32>
    %cst_51 = arith.constant 2.000000e+00 : f32
    %179 = vector.broadcast %cst_51 : f32 to vector<1x8x1xf32>
    %180 = arith.subf %179, %178 : vector<1x8x1xf32>
    %181 = arith.mulf %177, %180 : vector<1x8x1xf32>
    %cst_52 = arith.constant 0.000000e+00 : f32
    %182 = vector.shape_cast %181 : vector<1x8x1xf32> to vector<1x8x1xf32>
    %183 = vector.broadcast %182 : vector<1x8x1xf32> to vector<1x8x8xf32>
    %184 = vector.broadcast %cst_52 : f32 to vector<1x8x8xf32>
    %185 = arith.select %9, %183, %184 : vector<1x8x8xi1>, vector<1x8x8xf32>
    %186 = arith.mulf %170, %185 : vector<1x8x8xf32>
    %c0_53 = arith.constant 0 : index
    %c0_54 = arith.constant 0 : index
    %c0_55 = arith.constant 0 : index
    %187 = vector.load %arg4[%c0_53, %c0_54, %c0_55] : memref<1x8x8xf32, #tpu.memory_space<vmem>>, vector<1x8x8xf32>
    tpu.vector_store %arg4[%c0_53, %c0_54, %c0_55], %186 {strides = array<i32>} : memref<1x8x8xf32, #tpu.memory_space<vmem>>, vector<1x8x8xf32>,
    return
  }
  func.func @transform_0(%arg0: i32) -> (i32, i32, i32) {
    %c0_i32 = arith.constant 0 : i32
    %c0_i32_0 = arith.constant 0 : i32
    %c0_i32_1 = arith.constant 0 : i32
    return %arg0, %c0_i32, %c0_i32_0 : i32, i32, i32
  }
  func.func @transform_1(%arg0: i32) -> (i32, i32, i32) {
    %c0_i32 = arith.constant 0 : i32
    %c0_i32_0 = arith.constant 0 : i32
    %c0_i32_1 = arith.constant 0 : i32
    return %arg0, %c0_i32, %c0_i32_0 : i32, i32, i32
  }
  func.func @transform_2(%arg0: i32) -> (i32, i32, i32) {
    %c0_i32 = arith.constant 0 : i32
    %c0_i32_0 = arith.constant 0 : i32
    %c0_i32_1 = arith.constant 0 : i32
    return %arg0, %c0_i32, %c0_i32_0 : i32, i32, i32
  }
  func.func @transform_3(%arg0: i32) -> (i32, i32, i32) {
    %c0_i32 = arith.constant 0 : i32
    %c0_i32_0 = arith.constant 0 : i32
    %c0_i32_1 = arith.constant 0 : i32
    return %arg0, %c0_i32, %c0_i32_0 : i32, i32, i32
  }
}

</mosaic_0001>

<bundles_post_ra>
// kernel: tpu_custom_call.1
= control target key start
LH: loop header
LB: loop body
LE: loop exit
PB: predicated region body
PF: predicated region fallthrough
CT: control target
= control target key end

     0   :  { %8 = vsyncpa [#allocation3], 0  ;;  %s881_s0 = inlined_call_operand.vmem [shape: s32[2,1,1], index: 0, kind: input, shape index: {}]   ;;  %s882_s1 = inlined_call_operand.vmem [shape: s32[2,1,1], index: 1, kind: input, shape index: {}]   ;;  %s883_s2 = inlined_call_operand.hbm [shape: f32[2,8,8], index: 2, kind: input, shape index: {}]   ;;  %s884_s3 = inlined_call_operand.hbm [shape: f32[2,8,8], index: 3, kind: output, shape index: {}]  }
   0x1   :  { %10 = vsyncpa [#allocation3 + $0x1], 0 }
   0x2   :  { %11 = vsyncpa [#allocation4], 0 }
   0x3   :  { %13 = vsyncpa [#allocation4 + $0x1], 0  ;;  %s691_s12 = smov 0   ;;  %s693_s13 = smov 0  }
   0x4   :  { %s695_s14 = smov 0   ;;  %s697_s15 = smov 0  }
   0x5 LB: > { %s712_s16 = sadd.s32 4294967295, %s666_s15   ;;  %s492_s17 = sadd.s32 4294967294, %s666_s15   ;;  %s666_s15 = sphi %s697_s15, %s903_s15   ;;  %s662_s14 = sphi %s695_s14, %s902_s14   ;;  %s658_s13 = sphi %s693_s13, %s901_s13   ;;  %s654_s12 = sphi %s691_s12, %s900_s12  }
   0x6   : > { %s716_s18 = sadd.s32 1, %s666_s15   ;;  %s78_s19 = sadd.s32 1, %s662_s14 }
   0x7   : > { %s75_s20 = ssub.s32 %s666_s15, %s716_s18  ;;  %p85_p0 = scmp.ne.s32.totalorder %s662_s14, %s658_s13 }
   0x8   : > { %p76_p1 = scmp.eq.s32.totalorder %s75_s20, 0  ;;  %p86_p2 = scmp.eq.s32.totalorder %s666_s15, 0 }
   0x9   : > { %p91_p3 = scmp.ne.s32.totalorder %s658_s13, %s654_s12  ;;  %p92_p4 = scmp.eq.s32.totalorder %s712_s16, 0 }
   0xa   : > { %s728_s21 = scalar_select %p76_p1, %s662_s14, %s78_s19  }
   0xb   : > { %p730_p5 = por %p86_p2, %p85_p0  ;;  %p734_p6 = por %p92_p4, %p91_p3 }
   0xc   : > { %p115_p7 = scmp.eq.s32.totalorder %s712_s16, 1  ;;  %p121_p8 = scmp.eq.s32.totalorder %s492_s17, 1 }
   0xd   : > { %s888_s23 = scalar_select %p734_p6, 1, 0 }
   0xe   : > { %p518_p10 = scmp.lt.s32.totalorder %s666_s15, 2  ;;  %p741_p11 = por %p115_p7, %p85_p0 }
   0xf   : > { %p745_p12 = por %p121_p8, %p91_p3  ;;  %s153_s26 = sand.u32 1, %s662_s14  }
  0x10   : > { %s889_s24 = scalar_select %p741_p11, 1, 0 }
  0x11   : > { %s890_s25 = scalar_select %p745_p12, 1, 0 }
  0x12   : > { %s496_s27 = sshll.u32 %s666_s15, 7  ;;  %s495_s28 = sshll.u32 %s153_s26, 3 }
  0x13   : > { %s754_s4 = scalar_lea.hbm %s883_s2, %s496_s27  ;;  %s157_s5 = scalar_lea.vmem [#allocation2], %s495_s28 }
  0x14   : > { %s164_s6 = sshll.u32 %s157_s5, 4  ;;  %p758_p13 = pnand %p518_p10, %p730_p5  ;;  %s762_s6 = int_to_ptr.vmem [resolvable:$true] %s164_s6 }
  0x15   : > { %s154_s8 = scalar_lea.sflag [#allocation3], %s153_s26  ;;  %s574_s9 = scalar_lea.hbm %s754_s4, 128 }
  0x16   : > { %p575_p2 = scmp.ne.s32.totalorder %s754_s4, %s574_s9  ;;  %p576_p3 = pneg %p758_p13 }
  0x17   : > { %s579_s17 = scalar_lea.hbm %s883_s2, 256  ;;  %p580_p5 = scmp.lt.s32.totalorder %s754_s4, %s883_s2 }
  0x18   : > { %p577_p4 = pnand %p576_p3, %p575_p2  ;;  %p581_p8 = scmp.lt.s32.totalorder %s579_s17, %s574_s9 }
  0x1a   : > { %p578_p7 = pneg %p577_p4  ;;  %p582_p10 = por %p581_p8, %p580_p5 }
  0x1c   : > { %p583_p9 = pnand %p582_p10, %p578_p7 }
  0x1e   : > { %586 = shalt.err (!%p583_p9)
}
  0x1f   : > { %s587_s22 = scalar_lea.vmem %s762_s6, 128  ;;  %s668_s26 = smov [#allocation2]  }
  0x20   : > { %p588_p0 = scmp.ne.s32.totalorder %s762_s6, %s587_s22  ;;  %s592_s27 = sshll.u32 %s668_s26, 4  ;;  %s593_s27 = int_to_ptr.vmem [resolvable:$false] %s592_s27 }
  0x21   : > { %s594_s28 = scalar_lea.vmem %s593_s27, 256  ;;  %p595_p4 = scmp.lt.s32.totalorder %s762_s6, %s593_s27 }
  0x22   : > { %p590_p1 = pnand %p588_p0, %p576_p3  ;;  %p596_p12 = scmp.lt.s32.totalorder %s594_s28, %s587_s22 }
  0x24   : > { %p591_p2 = pneg %p590_p1  ;;  %p597_p11 = por %p596_p12, %p595_p4 }
  0x26   : > { %p598_p6 = pnand %p597_p11, %p591_p2 }
  0x28   : > { %601 = shalt.err (!%p598_p6)
}
  0x29   : > { %513 = dma.hbm_to_vmem [thread:$0]  (!%p758_p13), %s754_s4, 128, %s762_s6, %s154_s8  }
  0x2a   : > { %p892_p9 = scmp.lt.s32.totalorder %s666_s15, 3  ;;  %p893_p7 = scmp.ge.s32.totalorder %s666_s15, 1 }
  0x2c   : > { %p170_p0 = pnand %p893_p7, %p892_p9 }
  0x2d   : > { %s789_s29 = sand.u32 (!%p170_p0), 1, %s658_s13   ;;  %p894_p6 = scmp.ne.s32.totalorder (!%p170_p0), %s888_s23, 0 }
  0x2e   : > { %173 = sbr.rel (%p170_p0) target bundleno = 1252 (0x4e4), region = 32  ;;  %s498_s30 = sshll.u32 (!%p170_p0), %s789_s29, 3 }
  0x2f   : > { %s176_s5 = scalar_lea.sflag (!%p170_p0), [#allocation3], %s789_s29  ;;  %s179_s7 = scalar_lea.vmem (!%p170_p0), [#allocation2], %s498_s30 }
  0x33   : > { %645 = dma.done.wait (%p894_p6), %s176_s5, 128  }
  0x34   : > { %647 = vsyncadd (%p894_p6), %s176_s5, 4294967168  ;;  %p208_p11 = scmp.lt.s32.totalorder %s712_s16, 1  ;;  %v669_v0 = vmov 0   ;;  %v215_v3 = vlaneseq  ;;  %v214_v6 = vld [vmem:[%s179_s7] sm:$0xff]  ;;  %vm248_vm9 = vcmask 64512   ;;  %s503_s23 = sshll.u32 %s712_s16, 7 }
  0x35   : > { %553 = vset.pattern.permute.xlu0 %v669_v0  ;;  %v245_v8 = vadd.f32 0.0001, %v214_v6  ;;  %s207_s19 = scalar_lea.vmem [#allocation5], %s498_s30  ;;  %s402_s27 = scalar_lea.hbm %s884_s3, %s503_s23 }
  0x36   : > { %s209_s4 = scalar_select %p208_p11, %s712_s16, 1  ;;  %v218_v4 = vand.u32 127, %v215_v3  ;;  %v216_v5 = vshrl.u32 %v215_v3, 7 }
  0x37   : > { %s404_s20 = sshll.u32 %s207_s19, 4  ;;  %s391_s28 = scalar_lea.sflag [#allocation4], %s789_s29  ;;  %s405_s20 = int_to_ptr.vmem [resolvable:$true] %s404_s20 }
  0x38   : > { %s210_s9 = scalar_lea.vmem %s881_s0, %s209_s4  ;;  %s213_s17 = scalar_lea.vmem %s882_s1, %s209_s4  ;;  %vm238_vm0 = vcmp.lt.s32.totalorder %v216_v5, 5  ;;  %vm239_vm1 = vcmp.ge.s32.totalorder %v218_v4, 5  ;;  %vm241_vm2 = vcmp.ge.s32.totalorder %v216_v5, 5  ;;  %vm242_vm3 = vcmp.lt.s32.totalorder %v218_v4, 5 }
  0x39   : > { %v500_v1 = vld [vmem:[%s210_s9] ss:$0 sm:$0xff]  ;;  %vm240_vm4 = vmand %vm238_vm0, %vm239_vm1  ;;  %s602_s5 = scalar_lea.vmem %s405_s20, 128  ;;  %p897_p13 = scmp.ne.s32.totalorder %s889_s24, 0 }
  0x3a   : > { %226 = vperm.xlu0 %553, %v500_v1   ;;  %v501_v2 = vld [vmem:[%s213_s17] ss:$0 sm:$0xff]  ;;  %vm243_vm5 = vmand %vm241_vm2, %vm242_vm3  ;;  %p603_p12 = scmp.ne.s32.totalorder %s405_s20, %s602_s5  ;;  %s670_s16 = smov [#allocation5]  }
  0x3b   : > { %vm244_vm6 = vmor %vm240_vm4, %vm243_vm5  ;;  %s606_s30 = sshll.u32 %s670_s16, 4  ;;  %s607_s30 = int_to_ptr.vmem [resolvable:$false] %s606_s30 }
  0x3c   : > { %v246_v10 = vsel %vm244_vm6, 0.0, %v245_v8  ;;  %p604_p1 = pnand %p603_p12, %p897_p13  ;;  %s608_s7 = scalar_lea.vmem %s607_s30, 256 }
  0x3d   : > { %p609_p5 = scmp.lt.s32.totalorder %s405_s20, %s607_s30  ;;  %p610_p8 = scmp.lt.s32.totalorder %s608_s7, %s602_s5 }
  0x3e   : > { %234 = vperm.xlu0 %553, %v501_v2   ;;  %p605_p3 = pneg %p604_p1 }
  0x3f   : > { %p611_p10 = por %p610_p8, %p609_p5 }
  0x41   : > { %p612_p2 = pnand %p611_p10, %p605_p3 }
  0xb5   : > { %v227_v7 = vpop.permute.xlu0 %226 }
  0xb6   : > { %vm228_vm7 = vcmp.lt.s32.totalorder %v216_v5, %v227_v7 }
  0xb9   : > { %v235_v9 = vpop.permute.xlu0 %234 }
  0xba   : > { %vm236_vm8 = vcmp.lt.s32.totalorder %v218_v4, %v235_v9 }
  0xbb   : > { %vm807_vm10 = vmand %vm228_vm7, %vm236_vm8 }
  0xbc   : > { %v247_v12 = vsel %vm807_vm10, %v246_v10, 0.0 }
  0xbd   : > { %v249_v13 = vsel %vm248_vm9, %v247_v12, 0.0 }
  0xbe   : > { %v250_v14 = vrot.slane %v249_v13, 4 }
  0xc0   : > { %v251_v15 = vadd.f32 %v250_v14, %v249_v13 }
  0xc2   : > { %v252_v16 = vrot.slane %v251_v15, 2 }
  0xc4   : > { %v253_v17 = vadd.f32 %v252_v16, %v251_v15 }
  0xc6   : > { %v254_v18 = vrot.slane %v253_v17, 1 }
  0xc8   : > { %v255_v19 = vadd.f32 %v254_v18, %v253_v17 }
  0xca   : > { %554 = vrcp.f32 %v255_v19 }
  0xd7   : > { %v555_v20 = vpop.eup %554 }
  0xd8   : > { %v257_v21 = vmul.f32 %v555_v20, %v255_v19 }
  0xda   : > { %v258_v22 = vsub.f32 2.0, %v257_v21 }
  0xdc   : > { %v259_v23 = vmul.f32 %v555_v20, %v258_v22 }
  0xde   : > { %v260_v24 = vmul.f32 %v259_v23, %v255_v19 }
  0xe0   : > { %v261_v25 = vsub.f32 2.0, %v260_v24 }
  0xe2   : > { %v262_v26 = vmul.f32 %v261_v25, %v259_v23 }
  0xe4   : > { %v263_v27 = vsel %vm807_vm10, %v262_v26, 0.0 }
  0xe5   : > { %v264_v28 = vmul.f32 %v263_v27, %v247_v12 }
  0xe7   : > { %v265_v29 = vsel %vm248_vm9, %v264_v28, 0.0 }
  0xe8   : > { %266 = vadd.xlane.f32.xlu1 %v265_v29 }
 0x171   : > { %v267_v30 = vpop.xlane.xlu1 %266 }
 0x172   : > { %556 = vrcp.f32 %v267_v30 }
 0x17f   : > { %v557_v31 = vpop.eup %556 }
 0x180   : > { %v269_v32 = vmul.f32 %v557_v31, %v267_v30 }
 0x182   : > { %v270_v33 = vsub.f32 2.0, %v269_v32 }
 0x184   : > { %v271_v34 = vmul.f32 %v557_v31, %v270_v33 }
 0x186   : > { %v272_v35 = vmul.f32 %v271_v34, %v267_v30 }
 0x188   : > { %v273_v36 = vsub.f32 2.0, %v272_v35 }
 0x18a   : > { %v274_v37 = vmul.f32 %v273_v36, %v271_v34 }
 0x18c   : > { %v275_v38 = vsel %vm807_vm10, %v274_v37, 0.0 }
 0x18d   : > { %v276_v39 = vmul.f32 %v275_v38, %v264_v28 }
 0x18f   : > { %v277_v40 = vsel %vm248_vm9, %v276_v39, 0.0 }
 0x190   : > { %v278_v41 = vrot.slane %v277_v40, 4 }
 0x192   : > { %v279_v42 = vadd.f32 %v278_v41, %v277_v40 }
 0x194   : > { %v280_v43 = vrot.slane %v279_v42, 2 }
 0x196   : > { %v281_v44 = vadd.f32 %v280_v43, %v279_v42 }
 0x198   : > { %v282_v45 = vrot.slane %v281_v44, 1 }
 0x19a   : > { %v283_v46 = vadd.f32 %v282_v45, %v281_v44 }
 0x19c   : > { %558 = vrcp.f32 %v283_v46 }
 0x1a9   : > { %v559_v47 = vpop.eup %558 }
 0x1aa   : > { %v285_v48 = vmul.f32 %v559_v47, %v283_v46 }
 0x1ac   : > { %v286_v49 = vsub.f32 2.0, %v285_v48 }
 0x1ae   : > { %v287_v50 = vmul.f32 %v559_v47, %v286_v49 }
 0x1b0   : > { %v288_v51 = vmul.f32 %v287_v50, %v283_v46 }
 0x1b2   : > { %v289_v52 = vsub.f32 2.0, %v288_v51 }
 0x1b4   : > { %v290_v53 = vmul.f32 %v289_v52, %v287_v50 }
 0x1b6   : > { %v291_v54 = vsel %vm807_vm10, %v290_v53, 0.0 }
 0x1b7   : > { %v292_v55 = vmul.f32 %v291_v54, %v276_v39 }
 0x1b9   : > { %v293_v56 = vsel %vm248_vm9, %v292_v55, 0.0 }
 0x1ba   : > { %294 = vadd.xlane.f32.xlu1 %v293_v56 }
 0x243   : > { %v295_v57 = vpop.xlane.xlu1 %294 }
 0x244   : > { %560 = vrcp.f32 %v295_v57 }
 0x251   : > { %v561_v58 = vpop.eup %560 }
 0x252   : > { %v297_v59 = vmul.f32 %v561_v58, %v295_v57 }
 0x254   : > { %v298_v60 = vsub.f32 2.0, %v297_v59 }
 0x256   : > { %v299_v61 = vmul.f32 %v561_v58, %v298_v60 }
 0x258   : > { %v300_v62 = vmul.f32 %v299_v61, %v295_v57 }
 0x25a   : > { %v301_v63 = vsub.f32 2.0, %v300_v62 }
 0x25c   : > { %v302_v0 = vmul.f32 %v301_v63, %v299_v61 }
 0x25e   : > { %v303_v1 = vsel %vm807_vm10, %v302_v0, 0.0 }
 0x25f   : > { %v304_v2 = vmul.f32 %v303_v1, %v292_v55 }
 0x261   : > { %v305_v3 = vsel %vm248_vm9, %v304_v2, 0.0 }
 0x262   : > { %v306_v4 = vrot.slane %v305_v3, 4 }
 0x264   : > { %v307_v5 = vadd.f32 %v306_v4, %v305_v3 }
 0x266   : > { %v308_v6 = vrot.slane %v307_v5, 2 }
 0x268   : > { %v309_v7 = vadd.f32 %v308_v6, %v307_v5 }
 0x26a   : > { %v310_v8 = vrot.slane %v309_v7, 1 }
 0x26c   : > { %v311_v9 = vadd.f32 %v310_v8, %v309_v7 }
 0x26e   : > { %562 = vrcp.f32 %v311_v9 }
 0x27b   : > { %v563_v10 = vpop.eup %562 }
 0x27c   : > { %v313_v12 = vmul.f32 %v563_v10, %v311_v9 }
 0x27e   : > { %v314_v13 = vsub.f32 2.0, %v313_v12 }
 0x280   : > { %v315_v14 = vmul.f32 %v563_v10, %v314_v13 }
 0x282   : > { %v316_v15 = vmul.f32 %v315_v14, %v311_v9 }
 0x284   : > { %v317_v16 = vsub.f32 2.0, %v316_v15 }
 0x286   : > { %v318_v17 = vmul.f32 %v317_v16, %v315_v14 }
 0x288   : > { %v319_v18 = vsel %vm807_vm10, %v318_v17, 0.0 }
 0x289   : > { %v320_v19 = vmul.f32 %v319_v18, %v304_v2 }
 0x28b   : > { %v321_v20 = vsel %vm248_vm9, %v320_v19, 0.0 }
 0x28c   : > { %322 = vadd.xlane.f32.xlu0 %v321_v20 }
 0x315   : > { %v323_v21 = vpop.xlane.xlu0 %322 }
 0x316   : > { %564 = vrcp.f32 %v323_v21 }
 0x323   : > { %v565_v22 = vpop.eup %564 }
 0x324   : > { %v325_v23 = vmul.f32 %v565_v22, %v323_v21 }
 0x326   : > { %v326_v24 = vsub.f32 2.0, %v325_v23 }
 0x328   : > { %v327_v25 = vmul.f32 %v565_v22, %v326_v24 }
 0x32a   : > { %v328_v26 = vmul.f32 %v327_v25, %v323_v21 }
 0x32c   : > { %v329_v27 = vsub.f32 2.0, %v328_v26 }
 0x32e   : > { %v330_v28 = vmul.f32 %v329_v27, %v327_v25 }
 0x330   : > { %v331_v29 = vsel %vm807_vm10, %v330_v28, 0.0 }
 0x331   : > { %v332_v30 = vmul.f32 %v331_v29, %v320_v19 }
 0x333   : > { %v333_v31 = vsel %vm248_vm9, %v332_v30, 0.0 }
 0x334   : > { %v334_v32 = vrot.slane %v333_v31, 4 }
 0x336   : > { %v335_v33 = vadd.f32 %v334_v32, %v333_v31 }
 0x338   : > { %v336_v34 = vrot.slane %v335_v33, 2 }
 0x33a   : > { %v337_v35 = vadd.f32 %v336_v34, %v335_v33 }
 0x33c   : > { %v338_v36 = vrot.slane %v337_v35, 1 }
 0x33e   : > { %v339_v37 = vadd.f32 %v338_v36, %v337_v35 }
 0x340   : > { %566 = vrcp.f32 %v339_v37 }
 0x34d   : > { %v567_v38 = vpop.eup %566 }
 0x34e   : > { %v341_v39 = vmul.f32 %v567_v38, %v339_v37 }
 0x350   : > { %v342_v40 = vsub.f32 2.0, %v341_v39 }
 0x352   : > { %v343_v41 = vmul.f32 %v567_v38, %v342_v40 }
 0x354   : > { %v344_v42 = vmul.f32 %v343_v41, %v339_v37 }
 0x356   : > { %v345_v43 = vsub.f32 2.0, %v344_v42 }
 0x358   : > { %v346_v44 = vmul.f32 %v345_v43, %v343_v41 }
 0x35a   : > { %v347_v45 = vsel %vm807_vm10, %v346_v44, 0.0 }
 0x35b   : > { %v348_v46 = vmul.f32 %v347_v45, %v332_v30 }
 0x35d   : > { %v349_v47 = vsel %vm248_vm9, %v348_v46, 0.0 }
 0x35e   : > { %350 = vadd.xlane.f32.xlu1 %v349_v47 }
 0x3e7   : > { %v351_v48 = vpop.xlane.xlu1 %350 }
 0x3e8   : > { %568 = vrcp.f32 %v351_v48 }
 0x3f5   : > { %v569_v49 = vpop.eup %568 }
 0x3f6   : > { %v353_v50 = vmul.f32 %v569_v49, %v351_v48 }
 0x3f8   : > { %v354_v51 = vsub.f32 2.0, %v353_v50 }
 0x3fa   : > { %v355_v52 = vmul.f32 %v569_v49, %v354_v51 }
 0x3fc   : > { %v356_v53 = vmul.f32 %v355_v52, %v351_v48 }
 0x3fe   : > { %v357_v54 = vsub.f32 2.0, %v356_v53 }
 0x400   : > { %v358_v55 = vmul.f32 %v357_v54, %v355_v52 }
 0x402   : > { %v359_v56 = vsel %vm807_vm10, %v358_v55, 0.0 }
 0x403   : > { %v360_v57 = vmul.f32 %v359_v56, %v348_v46 }
 0x405   : > { %v361_v58 = vsel %vm248_vm9, %v360_v57, 0.0 }
 0x406   : > { %v362_v59 = vrot.slane %v361_v58, 4 }
 0x408   : > { %v363_v60 = vadd.f32 %v362_v59, %v361_v58 }
 0x40a   : > { %v364_v61 = vrot.slane %v363_v60, 2 }
 0x40c   : > { %v365_v62 = vadd.f32 %v364_v61, %v363_v60 }
 0x40e   : > { %v366_v63 = vrot.slane %v365_v62, 1 }
 0x410   : > { %v367_v0 = vadd.f32 %v366_v63, %v365_v62 }
 0x412   : > { %570 = vrcp.f32 %v367_v0 }
 0x41f   : > { %v571_v1 = vpop.eup %570 }
 0x420   : > { %v369_v2 = vmul.f32 %v571_v1, %v367_v0 }
 0x422   : > { %v370_v3 = vsub.f32 2.0, %v369_v2 }
 0x424   : > { %v371_v4 = vmul.f32 %v571_v1, %v370_v3 }
 0x426   : > { %v372_v5 = vmul.f32 %v371_v4, %v367_v0 }
 0x428   : > { %v373_v6 = vsub.f32 2.0, %v372_v5 }
 0x42a   : > { %v374_v7 = vmul.f32 %v373_v6, %v371_v4 }
 0x42c   : > { %v375_v8 = vsel %vm807_vm10, %v374_v7, 0.0 }
 0x42d   : > { %v376_v9 = vmul.f32 %v375_v8, %v360_v57 }
 0x42f   : > { %v377_v10 = vsel %vm248_vm9, %v376_v9, 0.0 }
 0x430   : > { %378 = vadd.xlane.f32.xlu1 %v377_v10 }
 0x4b9   : > { %v379_v12 = vpop.xlane.xlu1 %378 }
 0x4ba   : > { %572 = vrcp.f32 %v379_v12 }
 0x4c7   : > { %v573_v13 = vpop.eup %572 }
 0x4c8   : > { %v381_v14 = vmul.f32 %v573_v13, %v379_v12 }
 0x4ca   : > { %v382_v15 = vsub.f32 2.0, %v381_v14 }
 0x4cc   : > { %v383_v16 = vmul.f32 %v573_v13, %v382_v15 }
 0x4ce   : > { %v384_v17 = vmul.f32 %v383_v16, %v379_v12 }
 0x4d0   : > { %v385_v18 = vsub.f32 2.0, %v384_v17 }
 0x4d2   : > { %v386_v19 = vmul.f32 %v385_v18, %v383_v16 }
 0x4d4   : > { %v387_v20 = vsel %vm807_vm10, %v386_v19, 0.0 }
 0x4d5   : > { %v388_v21 = vmul.f32 %v387_v20, %v376_v9 }
 0x4d7   : > { %389 = vst.msk [vmem:[%s207_s19] sm:$0xff] %vm248_vm9, %v388_v21 }
 0x4d8   : > { %615 = shalt.err (!%p612_p2)
}
 0x4d9   : > { %s616_s4 = scalar_lea.hbm %s402_s27, 128  ;;  %s620_s8 = scalar_lea.hbm %s884_s3, 256 }
 0x4da   : > { %p617_p4 = scmp.ne.s32.totalorder %s402_s27, %s616_s4  ;;  %p621_p0 = scmp.lt.s32.totalorder %s402_s27, %s884_s3 }
 0x4db   : > { %p622_p6 = scmp.lt.s32.totalorder %s620_s8, %s616_s4 }
 0x4dc   : > { %p618_p9 = pnand %p617_p4, %p897_p13 }
 0x4dd   : > { %p623_p11 = por %p622_p6, %p621_p0 }
 0x4de   : > { %p619_p7 = pneg %p618_p9 }
 0x4e0   : > { %p624_p12 = pnand %p623_p11, %p619_p7 }
 0x4e2   : > { %627 = shalt.err (!%p624_p12)
}
 0x4e3   : > { %508 = dma.vmem_to_hbm [thread:$0]  (%p897_p13), %s405_s20, 128, %s402_s27, %s391_s28  }
 0x4e4 PF: > { %s416_s11 = sand.u32 1, %s654_s12   ;;  %p898_p1 = scmp.ne.s32.totalorder %s890_s25, 0 }
 0x4e5   : > { %p899_p3 = scmp.ge.s32.totalorder %s666_s15, 2  ;;  %s417_s17 = scalar_lea.sflag [#allocation4], %s416_s11 }
 0x4e7   : > { %p515_p5 = pnand %p899_p3, %p898_p1 }
 0x4e9   : > { %p516_p8 = pneg %p515_p5 }
 0x4eb   : > { %649 = dma.done.wait (%p516_p8), %s417_s17, 128  }
 0x4ec   : > { %651 = vsyncadd (%p516_p8), %s417_s17, 4294967168  ;;  %p16_p10 = scmp.ge.s32.totalorder %s716_s18, 4   ;;  %s900_s12 = smov %s658_s13 }
 0x4ed   : > { %s901_s13 = smov %s662_s14  ;;  %s902_s14 = smov %s728_s21 }
 0x4ee   : > { %s903_s15 = smov %s716_s18  ;;  %18 = sbr.rel (!%p16_p10) target bundleno = 5 (0x5), region = 83 }
 0x4f3   :  { %422 = vsyncpa [#allocation3], 1 }
 0x4f4   :  { %424 = vsyncpa [#allocation3 + $0x1], 1 }
 0x4f5   :  { %425 = vsyncpa [#allocation4], 1 }
 0x4f6   :  { %427 = vsyncpa [#allocation4 + $0x1], 1 }

</bundles_post_ra>
